<compile_context>
chip_gen: v7x
topology: tpu7x:2x2x1
jax: 0.10.0
libtpu: 0.0.40
codegen_flags: <defaults>
</compile_context>

<pallas_src>
import functools

import jax
import jax.numpy as jnp
from jax.experimental import pallas as pl
from jax.experimental.pallas import tpu as pltpu


def _focus_matmul_kernel(x_ref, w_ref, scale_ref, shift_ref, o_ref):
    # x_ref:     (TM, Kc)   bf16 im2col row tile
    # w_ref:     (Kc, C2p)  bf16 im2col-flattened conv weights (C2 zero-padded to C2p)
    # scale_ref: (1, C2p)   f32 folded BN scale = gamma / sqrt(var + eps)
    # shift_ref: (1, C2p)   f32 folded BN shift = beta - mean * scale
    # o_ref:     (TM, C2p)  bf16 output tile (lane dense: C2p % 128 == 0)
    acc = jnp.dot(x_ref[...], w_ref[...], preferred_element_type=jnp.float32)
    y = acc * scale_ref[...] + shift_ref[...]
    y = y * jnp.clip(y + 3.0, 0.0, 6.0) * (1.0 / 6.0)   # Hardswish, all lanes active
    o_ref[...] = y.astype(o_ref.dtype)


def focus_forward(x_nchw, weight_oihw, gamma, beta, running_mean, running_var,
                  *, k=1, stride=1, padding=None, eps=1e-5):
    """Forward of Focus (space-to-depth -> conv -> BN(eval) -> Hardswish). NCHW in/out."""
    N, c1, H, W = x_nchw.shape
    C2, c_in_w, Kh, Kw = weight_oihw.shape
    K = k
    assert Kh == Kw == K
    C1s = 4 * c1
    assert c_in_w == C1s, "conv in-channels must be 4*c1 (groups != 1 unsupported)"
    assert stride == 1, "TODO(synk): stride > 1 not implemented"
    assert H % 2 == 0 and W % 2 == 0
    P = (K // 2) if padding is None else padding
    H2, W2 = H // 2, W // 2
    Ho = H2 + 2 * P - K + 1
    Wo = W2 + 2 * P - K + 1
    Kc = K * K * C1s           # contraction size
    M = Ho * Wo                # matmul rows per image

    # --- Focus space-to-depth (matches torch.cat order) + NCHW->NHWC + pad + bf16.
    xs = jnp.concatenate(
        [x_nchw[:, :, 0::2, 0::2], x_nchw[:, :, 1::2, 0::2],
         x_nchw[:, :, 0::2, 1::2], x_nchw[:, :, 1::2, 1::2]], axis=1)   # (N, 4c1, H2, W2)
    x_nhwc = jnp.transpose(xs, (0, 2, 3, 1))                            # (N, H2, W2, C1s)
    x_pad = jnp.pad(x_nhwc, ((0, 0), (P, P), (P, P), (0, 0))).astype(jnp.bfloat16)

    # --- True im2col in the wrapper (tap order kh, kw with cin fastest, matching the
    #     weight flattening below).  K=1 (Focus default) is a plain reshape.
    taps = [x_pad[:, kh:kh + Ho, kw:kw + Wo, :] for kh in range(K) for kw in range(K)]
    if len(taps) == 1:
        x_cols = taps[0].reshape(N, M, C1s)
    else:
        x_cols = jnp.stack(taps, axis=3).reshape(N, M, Kc)              # (N, M, Kc) bf16

    # --- im2col-flattened weights, output channels zero-padded to a 128 multiple.
    C2p = max(128, ((C2 + 127) // 128) * 128)
    w_flat = jnp.transpose(weight_oihw, (2, 3, 1, 0)).reshape(Kc, C2)
    w_flat = jnp.pad(w_flat, ((0, 0), (0, C2p - C2))).astype(jnp.bfloat16)

    # --- Folded BatchNorm (inference).  Padded channels: scale=0, shift=0 -> output 0.
    scale = (gamma / jnp.sqrt(running_var + eps)).astype(jnp.float32)
    shift = (beta - running_mean * scale).astype(jnp.float32)
    scale_p = jnp.pad(scale, (0, C2p - C2)).reshape(1, C2p)
    shift_p = jnp.pad(shift, (0, C2p - C2)).reshape(1, C2p)

    # --- Row tiling: TM matmul rows per grid step.  Big tiles amortize per-step
    #     overhead (~0.35 us) and keep stores lane-dense; VMEM need stays < ~10 MiB.
    TARGET_ROWS = 4096
    if M <= TARGET_ROWS:
        TM, Mp = M, M
    else:
        TM = TARGET_ROWS                              # multiple of 8
        Mp = ((M + TM - 1) // TM) * TM
        if Mp > M:
            x_cols = jnp.pad(x_cols, ((0, 0), (0, Mp - M), (0, 0)))
    nRT = Mp // TM

    out_padded = pl.pallas_call(
        _focus_matmul_kernel,
        out_shape=jax.ShapeDtypeStruct((N, Mp, C2p), jnp.bfloat16),
        grid_spec=pltpu.PrefetchScalarGridSpec(
            num_scalar_prefetch=0,
            grid=(N, nRT),
            in_specs=[
                # Row-blocked im2col input: one (TM, Kc) tile per grid step.
                pl.BlockSpec((None, TM, Kc), lambda n, t: (n, t, 0)),
                # Constant operands (index map never changes -> fetched once).
                pl.BlockSpec((Kc, C2p), lambda n, t: (0, 0)),
                pl.BlockSpec((1, C2p), lambda n, t: (0, 0)),
                pl.BlockSpec((1, C2p), lambda n, t: (0, 0)),
            ],
            out_specs=pl.BlockSpec((None, TM, C2p), lambda n, t: (n, t, 0)),
        ),
        compiler_params=pltpu.CompilerParams(
            dimension_semantics=("parallel", "parallel"),
            # ~6-10 MiB actually needed; 32 MiB leaves headroom and is safe on
            # v5e/v6e (128 MiB physical) and v7x (64 MiB physical per TC).
            vmem_limit_bytes=32 * 1024 * 1024,
        ),
    )(x_cols, w_flat, scale_p, shift_p)

    # Glue: drop row/channel padding, restore (Ho, Wo), return NCHW f32.
    out = out_padded[:, :M, :C2].reshape(N, Ho, Wo, C2)
    return jnp.transpose(out, (0, 3, 1, 2)).astype(jnp.float32)


def _reference(x_nchw, weight_oihw, gamma, beta, running_mean, running_var,
               *, k=1, stride=1, padding=None, eps=1e-5):
    """Pure-JAX Focus reference (inputs rounded to bf16 to mirror the kernel's matmul)."""
    K = k
    P = (K // 2) if padding is None else padding
    xs = jnp.concatenate(
        [x_nchw[:, :, 0::2, 0::2], x_nchw[:, :, 1::2, 0::2],
         x_nchw[:, :, 0::2, 1::2], x_nchw[:, :, 1::2, 1::2]], axis=1)
    xs = xs.astype(jnp.bfloat16).astype(jnp.float32)
    w = weight_oihw.astype(jnp.bfloat16).astype(jnp.float32)
    y = jax.lax.conv_general_dilated(
        xs, w, window_strides=(stride, stride), padding=[(P, P), (P, P)],
        dimension_numbers=("NCHW", "OIHW", "NCHW"),
        precision=jax.lax.Precision.HIGHEST,
    )
    scale = (gamma / jnp.sqrt(running_var + eps)).reshape(1, -1, 1, 1)
    shift = (beta - running_mean * gamma / jnp.sqrt(running_var + eps)).reshape(1, -1, 1, 1)
    y = y * scale + shift
    return y * jnp.clip(y + 3.0, 0.0, 6.0) / 6.0


if __name__ == "__main__":
    key = jax.random.PRNGKey(0)
    k_x, k_w1, k_w3, k_g, k_b, k_m, k_v = jax.random.split(key, 7)

    N, c1, H, W = 2, 4, 16, 16          # Focus input: (N, c1, H, W)
    C2 = 8
    C1s = 4 * c1                        # conv in-channels after space-to-depth

    x = jax.random.normal(k_x, (N, c1, H, W), dtype=jnp.float32)
    gamma = 1.0 + 0.1 * jax.random.normal(k_g, (C2,), dtype=jnp.float32)
    beta = 0.1 * jax.random.normal(k_b, (C2,), dtype=jnp.float32)
    running_mean = 0.1 * jax.random.normal(k_m, (C2,), dtype=jnp.float32)
    running_var = 1.0 + 0.1 * jax.random.uniform(k_v, (C2,), dtype=jnp.float32)

    # k=1 is the Focus default (pure matmul); k=3 exercises the im2col path.
    for k_sz, k_w in ((1, k_w1), (3, k_w3)):
        fan_in = C1s * k_sz * k_sz
        bound = (1.0 / fan_in) ** 0.5
        w = jax.random.uniform(k_w, (C2, C1s, k_sz, k_sz),
                               minval=-bound, maxval=bound, dtype=jnp.float32)

        out = focus_forward(x, w, gamma, beta, running_mean, running_var, k=k_sz)
        out = jax.block_until_ready(out)

        ref = _reference(x, w, gamma, beta, running_mean, running_var, k=k_sz)
        assert out.shape == (N, C2, H // 2, W // 2), (k_sz, out.shape)
        # bf16 output rounding (intentional bandwidth trade) -> ~0.4% tolerance.
        assert jnp.allclose(out, ref, atol=2e-2, rtol=2e-2), f"mismatch vs reference (k={k_sz})"

    print("KERNEL_OK")
</pallas_src>

<mosaic_0001>
module attributes {stable_mosaic.version = 11 : i64} {
  func.func @_focus_matmul_kernel(%arg0: i32, %arg1: i32, %arg2: memref<1x64x16xbf16, #tpu.memory_space<vmem>>, %arg3: memref<16x128xbf16, #tpu.memory_space<vmem>>, %arg4: memref<1x128xf32, #tpu.memory_space<vmem>>, %arg5: memref<1x128xf32, #tpu.memory_space<vmem>>, %arg6: memref<1x64x128xbf16, #tpu.memory_space<vmem>>) attributes {dimension_semantics = [#tpu.dimension_semantics<parallel>, #tpu.dimension_semantics<parallel>], iteration_bounds = array<i64: 2, 1>, scalar_prefetch = 0 : i64, scratch_operands = 0 : i64, tpu.core_type = #tpu.core_type<tc>, window_params = [{transform_indices = @transform_0, window_bounds = array<i64: 1, 64, 16>}, {pipeline_mode = #tpu.pipeline_mode<synchronous>, transform_indices = @transform_1, window_bounds = array<i64: 16, 128>}, {pipeline_mode = #tpu.pipeline_mode<synchronous>, transform_indices = @transform_2, window_bounds = array<i64: 1, 128>}, {pipeline_mode = #tpu.pipeline_mode<synchronous>, transform_indices = @transform_3, window_bounds = array<i64: 1, 128>}, {transform_indices = @transform_4, window_bounds = array<i64: 1, 64, 128>}]} {
    %c0 = arith.constant 0 : index
    %c0_0 = arith.constant 0 : index
    %c0_1 = arith.constant 0 : index
    %0 = vector.load %arg2[%c0, %c0_0, %c0_1] : memref<1x64x16xbf16, #tpu.memory_space<vmem>>, vector<1x64x16xbf16>
    %1 = vector.shape_cast %0 : vector<1x64x16xbf16> to vector<64x16xbf16>
    %c0_2 = arith.constant 0 : index
    %c0_3 = arith.constant 0 : index
    %2 = vector.load %arg3[%c0_2, %c0_3] : memref<16x128xbf16, #tpu.memory_space<vmem>>, vector<16x128xbf16>
    %cst = arith.constant dense<0.000000e+00> : vector<64x128xf32>
    %3 = tpu.matmul %1, %2, %cst {dimension_numbers = #tpu.dot_dimension_numbers<[1], [0], [0], [1], [0, 0, 1, 1], [], []>} : vector<64x16xbf16>, vector<16x128xbf16>, vector<64x128xf32> -> vector<64x128xf32>
    %c0_4 = arith.constant 0 : index
    %c0_5 = arith.constant 0 : index
    %4 = vector.load %arg4[%c0_4, %c0_5] : memref<1x128xf32, #tpu.memory_space<vmem>>, vector<1x128xf32>
    %5 = vector.broadcast %4 : vector<1x128xf32> to vector<64x128xf32>
    %6 = arith.mulf %3, %5 : vector<64x128xf32>
    %c0_6 = arith.constant 0 : index
    %c0_7 = arith.constant 0 : index
    %7 = vector.load %arg5[%c0_6, %c0_7] : memref<1x128xf32, #tpu.memory_space<vmem>>, vector<1x128xf32>
    %8 = vector.broadcast %7 : vector<1x128xf32> to vector<64x128xf32>
    %9 = arith.addf %6, %8 : vector<64x128xf32>
    %cst_8 = arith.constant 3.000000e+00 : f32
    %10 = vector.broadcast %cst_8 : f32 to vector<64x128xf32>
    %11 = arith.addf %9, %10 : vector<64x128xf32>
    %cst_9 = arith.constant 0.000000e+00 : f32
    %cst_10 = arith.constant 6.000000e+00 : f32
    %12 = vector.broadcast %cst_9 : f32 to vector<64x128xf32>
    %13 = arith.maximumf %12, %11 : vector<64x128xf32>
    %14 = vector.broadcast %cst_10 : f32 to vector<64x128xf32>
    %15 = arith.minimumf %14, %13 : vector<64x128xf32>
    %16 = arith.mulf %9, %15 : vector<64x128xf32>
    %cst_11 = arith.constant 0.166666672 : f32
    %17 = vector.broadcast %cst_11 : f32 to vector<64x128xf32>
    %18 = arith.mulf %16, %17 : vector<64x128xf32>
    %19 = arith.truncf %18 : vector<64x128xf32> to vector<64x128xbf16>
    %c0_12 = arith.constant 0 : index
    %c0_13 = arith.constant 0 : index
    %c0_14 = arith.constant 0 : index
    %20 = vector.load %arg6[%c0_12, %c0_13, %c0_14] : memref<1x64x128xbf16, #tpu.memory_space<vmem>>, vector<1x64x128xbf16>
    %21 = vector.shape_cast %20 : vector<1x64x128xbf16> to vector<64x128xbf16>
    %22 = vector.shape_cast %19 : vector<64x128xbf16> to vector<1x64x128xbf16>
    tpu.vector_store %arg6[%c0_12, %c0_13, %c0_14], %22 {strides = array<i32>} : memref<1x64x128xbf16, #tpu.memory_space<vmem>>, vector<1x64x128xbf16>,
    return
  }
  func.func @transform_0(%arg0: i32, %arg1: i32) -> (i32, i32, i32) {
    %c0_i32 = arith.constant 0 : i32
    %c0_i32_0 = arith.constant 0 : i32
    return %arg0, %arg1, %c0_i32 : i32, i32, i32
  }
  func.func @transform_1(%arg0: i32, %arg1: i32) -> (i32, i32) {
    %c0_i32 = arith.constant 0 : i32
    %c0_i32_0 = arith.constant 0 : i32
    %c0_i32_1 = arith.constant 0 : i32
    return %c0_i32, %c0_i32_0 : i32, i32
  }
  func.func @transform_2(%arg0: i32, %arg1: i32) -> (i32, i32) {
    %c0_i32 = arith.constant 0 : i32
    %c0_i32_0 = arith.constant 0 : i32
    %c0_i32_1 = arith.constant 0 : i32
    return %c0_i32, %c0_i32_0 : i32, i32
  }
  func.func @transform_3(%arg0: i32, %arg1: i32) -> (i32, i32) {
    %c0_i32 = arith.constant 0 : i32
    %c0_i32_0 = arith.constant 0 : i32
    %c0_i32_1 = arith.constant 0 : i32
    return %c0_i32, %c0_i32_0 : i32, i32
  }
  func.func @transform_4(%arg0: i32, %arg1: i32) -> (i32, i32, i32) {
    %c0_i32 = arith.constant 0 : i32
    %c0_i32_0 = arith.constant 0 : i32
    return %arg0, %arg1, %c0_i32 : i32, i32, i32
  }
}

</mosaic_0001>

<bundles_post_ra>
// kernel: tpu_custom_call.1
= control target key start
LH: loop header
LB: loop body
LE: loop exit
PB: predicated region body
PF: predicated region fallthrough
CT: control target
= control target key end

     0   :  { %9 = vsyncpa [#allocation3], 0  ;;  %s927_s0 = inlined_call_operand.vmem [shape: bf16[2,64,16], index: 0, kind: input, shape index: {}]   ;;  %s928_s1 = inlined_call_operand.vmem [shape: bf16[16,128], index: 1, kind: input, shape index: {}]   ;;  %s929_s2 = inlined_call_operand.vmem [shape: f32[1,128], index: 2, kind: input, shape index: {}]   ;;  %s930_s3 = inlined_call_operand.vmem [shape: f32[1,128], index: 3, kind: input, shape index: {}]   ;;  %s931_s4 = inlined_call_operand.hbm [shape: bf16[2,64,128], index: 4, kind: output, shape index: {}]  }
   0x1   :  { %11 = vsyncpa [#allocation3 + $0x1], 0  ;;  %s799_s15 = smov 0   ;;  %s801_s16 = smov 0  }
   0x2   :  { %s803_s17 = smov 0   ;;  %s805_s18 = smov 0  }
   0x3   :  { %s807_s19 = smov 0   ;;  %s809_s20 = smov 0  }
   0x4 LB: > { %s547_s21 = sadd.s32 4294967295, %s769_s20   ;;  %s548_s22 = sadd.s32 4294967294, %s769_s20   ;;  %s769_s20 = sphi %s809_s20, %s17_s20   ;;  %s765_s19 = sphi %s807_s19, %s938_s19   ;;  %s761_s18 = sphi %s805_s18, %s937_s18   ;;  %s757_s17 = sphi %s803_s17, %s936_s17   ;;  %s753_s16 = sphi %s801_s16, %s935_s16   ;;  %s749_s15 = sphi %s799_s15, %s934_s15  }
   0x5   : > { %s29_s23 = sadd.s32 1, %s765_s19  ;;  %s129_s24 = sadd.s32 1, %s757_s17 }
   0x6   : > { %p31_p0 = scmp.ge.s32.totalorder %s29_s23, 2  ;;  %p139_p1 = scmp.ne.s32.totalorder %s757_s17, %s753_s16 }
   0x7   : > { %p140_p2 = scmp.eq.s32.totalorder %s547_s21, 1  ;;  %p145_p3 = scmp.ne.s32.totalorder %s753_s16, %s749_s15 }
   0x8   : > { %s940_s23 = smov (%p31_p0, %s29_s23), 0  ;;  %p146_p5 = scmp.eq.s32.totalorder %s548_s22, 1 }
   0x9   : > { %p839_p4 = por %p140_p2, %p139_p1  ;;  %s124_s26 = ssub.s32 %s765_s19, %s940_s23 }
   0xa   : > { %p551_p6 = scmp.ge.s32.totalorder %s769_s20, 1  ;;  %p127_p7 = scmp.eq.s32.totalorder %s124_s26, 0 }
   0xb   : > { %p846_p8 = por %p146_p5, %p145_p3  ;;  %p186_p9 = scmp.lt.s32.totalorder %s769_s20, 3 }
   0xc   : > { %s852_s28 = scalar_select %p127_p7, %s757_s17, %s129_s24  }
   0xd   : > { %p187_p10 = pnand %p551_p6, %p186_p9 }
   0xe   : > { %v686_v0 = vld [vmem:[%s928_s1] sm:$0xff] (!%p187_p10)   ;;  %p217_p11 = scmp.lt.s32.totalorder (!%p187_p10), %s761_s18, 1  ;;  %vm264_vm0 = vcmask (!%p187_p10), 130048   ;;  %s213_s14 = sand.u32 (!%p187_p10), 1, %s753_s16  }
   0xf   : > { %190 = sbr.rel (%p187_p10) target bundleno = 274 (0x112), region = 36  ;;  %617 = vmatprep.subr.bf16.mxu0 (!%p187_p10), %v686_v0  ;;  %627 = vmatprep.subr.bf16.mxu1 (!%p187_p10), %v686_v0  ;;  %v564_v5 = vld [vmem:[%s929_s2] ss:$0 sm:$0xff] (!%p187_p10)  ;;  %s552_s21 = sshll.u32 (!%p187_p10), %s213_s14, 5 }
  0x10   : > { %618 = vmatpush3.bf16.msra.mxu0 (!%p187_p10), %v686_v0  ;;  %628 = vmatpush3.bf16.msra.mxu1 (!%p187_p10), %v686_v0  ;;  %v565_v7 = vld [vmem:[%s930_s3] ss:$0 sm:$0xff] (!%p187_p10)  ;;  %s588_s22 = sshll.u32 (!%p187_p10), %s761_s18, 9  ;;  %s215_s24 = scalar_lea.vmem (!%p187_p10), [#allocation2], %s552_s21 }
  0x11   : > { %s468_s26 = sshll.u32 (!%p187_p10), %s215_s24, 4  ;;  %s771_s7 = smov (!%p187_p10), [#allocation2]   ;;  %s877_s26 = int_to_ptr.vmem [resolvable:$true] %s468_s26 }
  0x12   : > { %s695_s8 = sshll.u32 (!%p187_p10), %s771_s7, 4  ;;  %s696_s8 = int_to_ptr.vmem [resolvable:$false] %s695_s8 }
  0x13   : > { %p698_p1 = scmp.lt.s32.totalorder (!%p187_p10), %s877_s26, %s696_s8 }
  0x16   : > { %s218_s5 = scalar_select %p217_p11, %s761_s18, 1 }
  0x17   : > { %s875_s18 = scalar_lea.hbm %s931_s4, %s588_s22 }
  0x18   : > { %s579_s6 = sshll.u32 %s218_s5, 5  ;;  %s881_s5 = scalar_lea.sflag [#allocation3], %s213_s14 }
  0x19   : > { %s224_s9 = scalar_lea.vmem %s927_s0, %s579_s6  ;;  %s691_s6 = scalar_lea.vmem %s877_s26, 512 }
  0x1a   : > { %v687_v1 = vld [vmem:[%s224_s9] sm:$0xff]   ;;  %v688_v2 = vld [vmem:[%s224_s9 + $0x10] sm:$0xff]   ;;  %v689_v3 = vld [vmem:[%s224_s9 + $0x8] sm:$0xff]   ;;  %p692_p12 = scmp.ne.s32.totalorder %s877_s26, %s691_s6 }
  0x1b   : > { %619 = vmatprep.mubr.msk.bf16.mxu0 %vm264_vm0, %v687_v1  ;;  %623 = vmatprep.mubr.msk.bf16.mxu1 %vm264_vm0, %v688_v2  ;;  %v690_v4 = vld [vmem:[%s224_s9 + $0x18] sm:$0xff]   ;;  %s697_s9 = scalar_lea.vmem %s696_s8, 1024 }
  0x1c   : > { %620 = vmatmul.mubr.msk.bf16.vlgmr.msra.gmra.mrb[0].mxu0 %vm264_vm0, %v689_v3  ;;  %624 = vmatmul.mubr.msk.bf16.vlgmr.msra.gmra.mrb[0].mxu1 %vm264_vm0, %v690_v4  ;;  %p693_p13 = pnand %p692_p12, %p839_p4  ;;  %p699_p2 = scmp.lt.s32.totalorder %s697_s9, %s691_s6 }
  0x1e   : > { %p694_p0 = pneg %p693_p13  ;;  %p700_p3 = por %p699_p2, %p698_p1 }
  0x20   : > { %p701_p5 = pnand %p700_p3, %p694_p0 }
  0xef   : > { %v621_v6 = vpop.f32.mrb[0].mxu0  ;;  %v625_v9 = vpop.f32.mrb[0].mxu1 }
  0xf0   : > { %v351_v8 = vmul.f32 %v621_v6, %v564_v5  ;;  %v311_v10 = vpop.f32.mrb[1].mxu0  ;;  %v355_v11 = vmul.f32 %v625_v9, %v564_v5  ;;  %v327_v13 = vpop.f32.mrb[1].mxu1 }
  0xf1   : > { %v349_v12 = vmul.f32 %v564_v5, %v311_v10  ;;  %v622_v14 = vpop.f32.mrb[2].mxu0  ;;  %v353_v16 = vmul.f32 %v564_v5, %v327_v13  ;;  %v626_v18 = vpop.f32.mrb[2].mxu1 }
  0xf2   : > { %v366_v15 = vadd.f32 %v565_v7, %v351_v8  ;;  %v352_v17 = vmul.f32 %v622_v14, %v564_v5  ;;  %v314_v19 = vpop.f32.mrb[3].mxu0  ;;  %v370_v20 = vadd.f32 %v565_v7, %v355_v11  ;;  %v356_v22 = vmul.f32 %v626_v18, %v564_v5  ;;  %v330_v24 = vpop.f32.mrb[3].mxu1 }
  0xf3   : > { %v364_v21 = vadd.f32 %v565_v7, %v349_v12  ;;  %v350_v23 = vmul.f32 %v564_v5, %v314_v19  ;;  %v368_v26 = vadd.f32 %v565_v7, %v353_v16  ;;  %v354_v28 = vmul.f32 %v564_v5, %v330_v24 }
  0xf4   : > { %v374_v25 = vadd.f32 3.0, %v366_v15  ;;  %v367_v27 = vadd.f32 %v565_v7, %v352_v17  ;;  %v378_v29 = vadd.f32 3.0, %v370_v20  ;;  %v371_v31 = vadd.f32 %v565_v7, %v356_v22 }
  0xf5   : > { %v372_v30 = vadd.f32 3.0, %v364_v21  ;;  %v365_v32 = vadd.f32 %v565_v7, %v350_v23  ;;  %v376_v34 = vadd.f32 3.0, %v368_v26  ;;  %v369_v36 = vadd.f32 %v565_v7, %v354_v28 }
  0xf6   : > { %v382_v33 = vmax.f32 %v374_v25, 0.0  ;;  %v375_v35 = vadd.f32 3.0, %v367_v27  ;;  %v386_v37 = vmax.f32 %v378_v29, 0.0  ;;  %v379_v39 = vadd.f32 3.0, %v371_v31 }
  0xf7   : > { %v380_v38 = vmax.f32 %v372_v30, 0.0  ;;  %v373_v40 = vadd.f32 3.0, %v365_v32  ;;  %v384_v42 = vmax.f32 %v376_v34, 0.0  ;;  %v377_v44 = vadd.f32 3.0, %v369_v36 }
  0xf8   : > { %v390_v41 = vmin.f32 %v382_v33, 6.0  ;;  %v383_v43 = vmax.f32 %v375_v35, 0.0  ;;  %v394_v45 = vmin.f32 %v386_v37, 6.0  ;;  %v387_v47 = vmax.f32 %v379_v39, 0.0 }
  0xf9   : > { %v388_v46 = vmin.f32 %v380_v38, 6.0  ;;  %v381_v48 = vmax.f32 %v373_v40, 0.0  ;;  %v392_v50 = vmin.f32 %v384_v42, 6.0  ;;  %v385_v52 = vmax.f32 %v377_v44, 0.0 }
  0xfa   : > { %v398_v49 = vmul.f32 %v390_v41, %v366_v15  ;;  %v391_v51 = vmin.f32 %v383_v43, 6.0  ;;  %v402_v53 = vmul.f32 %v394_v45, %v370_v20  ;;  %v395_v55 = vmin.f32 %v387_v47, 6.0 }
  0xfb   : > { %v396_v54 = vmul.f32 %v388_v46, %v364_v21  ;;  %v389_v56 = vmin.f32 %v381_v48, 6.0  ;;  %v400_v57 = vmul.f32 %v392_v50, %v368_v26  ;;  %v393_v59 = vmin.f32 %v385_v52, 6.0 }
  0xfc   : > { %v399_v58 = vmul.f32 %v391_v51, %v367_v27  ;;  %v403_v60 = vmul.f32 %v395_v55, %v371_v31  ;;  %v406_v62 = vmul.f32 0.16666667, %v398_v49  ;;  %v410_v63 = vmul.f32 0.16666667, %v402_v53 }
  0xfd   : > { %v397_v61 = vmul.f32 %v389_v56, %v365_v32  ;;  %v401_v1 = vmul.f32 %v393_v59, %v369_v36  ;;  %v404_v2 = vmul.f32 0.16666667, %v396_v54  ;;  %v408_v5 = vmul.f32 0.16666667, %v400_v57 }
  0xfe   : > { %v407_v0 = vmul.f32 0.16666667, %v399_v58  ;;  %v411_v3 = vmul.f32 0.16666667, %v403_v60 }
  0xff   : > { %v405_v4 = vmul.f32 0.16666667, %v397_v61  ;;  %v409_v7 = vmul.f32 0.16666667, %v401_v1 }
 0x100   : > { %v597_v6 = vpack.c.bf16 %v407_v0, %v406_v62  ;;  %v607_v8 = vpack.c.bf16 %v411_v3, %v410_v63 }
 0x101   : > { %v592_v9 = vpack.c.bf16 %v405_v4, %v404_v2  ;;  %v602_v10 = vpack.c.bf16 %v409_v7, %v408_v5 }
 0x102   : > { %609 = vst [vmem:[%s215_s24 + $0x8] sm:$0xff] %v597_v6   ;;  %611 = vst [vmem:[%s215_s24 + $0x18] sm:$0xff] %v607_v8  }
 0x103   : > { %593 = vst [vmem:[%s215_s24] sm:$0xff] %v592_v9   ;;  %610 = vst [vmem:[%s215_s24 + $0x10] sm:$0xff] %v602_v10  }
 0x104   : > { %704 = shalt.err (!%p701_p5)
}
 0x105   : > { %s705_s10 = scalar_lea.hbm %s875_s18, 512  ;;  %s709_s13 = scalar_lea.hbm %s931_s4, 1024 }
 0x106   : > { %p706_p6 = scmp.ne.s32.totalorder %s875_s18, %s705_s10  ;;  %p710_p10 = scmp.lt.u32.totalorder %s875_s18, %s931_s4 }
 0x107   : > { %p711_p11 = scmp.lt.u32.totalorder %s709_s13, %s705_s10  ;;  %p713_p13 = scmp.lt.u32.totalorder %s705_s10, %s875_s18 }
 0x108   : > { %p707_p7 = pnand %p706_p6, %p839_p4 }
 0x109   : > { %p712_p12 = por %p711_p11, %p710_p10 }
 0x10a   : > { %p708_p9 = pneg %p707_p7 }
 0x10b   : > { %p714_p0 = por %p713_p13, %p712_p12 }
 0x10d   : > { %p715_p1 = pnand %p714_p0, %p708_p9 }
 0x10f   : > { %718 = shalt.err (!%p715_p1)
}
 0x110   : > { %s772_s22 = smov 64   ;;  %s773_s24 = smov 4  }
 0x111   : > { %629 = dma.vmem_to_hbm [thread:$0]  (%p839_p4), %s877_s26, 512, %s875_s18, %s881_s5, %s772_s22, %s772_s22, %s773_s24  }
 0x112 PF: > { %p635_p2 = scmp.ge.s32.totalorder %s769_s20, 2  ;;  %s483_s29 = sand.u32 1, %s749_s15  }
 0x113   : > { %s484_s30 = scalar_lea.sflag [#allocation3], %s483_s29 }
 0x114   : > { %p632_p3 = pnand %p635_p2, %p846_p8 }
 0x116   : > { %744 = dma.done.wait (!%p632_p3), %s484_s30, 512  }
 0x117   : > { %746 = vsyncadd (!%p632_p3), %s484_s30, 4294966784  ;;  %s17_s20 = sadd.s32 1, %s769_s20   ;;  %s934_s15 = smov %s753_s16 }
 0x118   : > { %p14_p5 = scmp.ge.s32.totalorder %s17_s20, 4   ;;  %s935_s16 = smov %s757_s17 }
 0x119   : > { %s936_s17 = smov %s852_s28  ;;  %s937_s18 = smov %s765_s19 }
 0x11a   : > { %s938_s19 = smov %s940_s23  ;;  %16 = sbr.rel (!%p14_p5) target bundleno = 4 (0x4), region = 71 }
 0x121   :  { %489 = vsyncpa [#allocation3], 1 }
 0x122   :  { %491 = vsyncpa [#allocation3 + $0x1], 1 }

</bundles_post_ra>
